<compile_context>
chip_gen: v5e
topology: v5e:2x2
jax: 0.10.0
libtpu: 0.0.40
codegen_flags: <defaults>
</compile_context>

<pallas_src>
import math

import jax
import jax.numpy as jnp
from jax.experimental import pallas as pl
from jax.experimental.pallas import tpu as pltpu

ALPHA = 2          # module default
BETA = 4           # module default
EPS = 1e-14
LOG_EPS = math.log(EPS)   # ~ -32.236; saturation floor of log(p + 1e-14)

LANES = 512        # lane-dense width (4 x 128 lanes)
TILE_R = 1024      # rows per block -> 2 MiB f32 / 1 MiB bf16 per operand block


def _heatmap_loss_math(x_in, t_in):
    """Elementwise focal heatmap loss, f32 internal math (shared by kernel & tail)."""
    x = x_in.astype(jnp.float32)
    t = t_in.astype(jnp.float32)

    # Stable log-sigmoid:
    #   log(p)     = min(x, 0) - log(1 + exp(-|x|))
    #   log(1 - p) = log(p) - x                      (exact identity)
    #   p          = exp(log(p))                     (EUP; avoids 1/(1+e) + select)
    # Clamp the logs at log(1e-14) to mirror the reference's log(p + 1e-14)
    # saturation and avoid 0 * (-inf) NaNs at extreme logits.
    e = jnp.exp(-jnp.abs(x))                  # in (0, 1], never overflows
    lse = jnp.log(1.0 + e)                    # softplus(-|x|), in (0, log 2]
    log_p_raw = jnp.minimum(x, 0.0) - lse
    log_1mp_raw = log_p_raw - x
    log_p = jnp.maximum(log_p_raw, LOG_EPS)
    log_1mp = jnp.maximum(log_1mp_raw, LOG_EPS)

    p = jnp.exp(log_p_raw)
    one_minus_p = 1.0 - p
    one_minus_t = 1.0 - t
    omt2 = one_minus_t * one_minus_t

    center_term = (one_minus_p * one_minus_p) * log_p        # alpha = 2
    other_term = (omt2 * omt2) * (p * p) * log_1mp           # beta = 4, alpha = 2
    return -jnp.where(t == 1.0, center_term, other_term)


def _heatmap_loss_kernel(x_ref, t_ref, o_ref):
    o_ref[...] = _heatmap_loss_math(x_ref[...], t_ref[...]).astype(o_ref.dtype)


def heatmap_loss(inputs, targets):
    """Elementwise CornerNet focal heatmap loss; returns same shape/dtype as inputs."""
    assert inputs.shape == targets.shape
    orig_shape = inputs.shape
    out_dtype = inputs.dtype
    total = math.prod(orig_shape) if orig_shape else 1

    x = inputs.reshape(-1)
    t = targets.reshape(-1)

    main = (total // LANES) * LANES
    rem = total - main

    parts = []
    if main:
        rows = main // LANES
        x2 = x[:main].reshape(rows, LANES)
        t2 = t[:main].reshape(rows, LANES)

        # Block rows: full extent when small (legal "equals full dim" block,
        # valid for any dtype), else 1024-row tiles (multiple of 8 and 16, so
        # f32 and bf16 tilings are both satisfied).  A partial trailing block
        # is fine (Pallas pads reads / masks writes).
        block_r = TILE_R if rows >= TILE_R else rows
        grid = (pl.cdiv(rows, block_r),)

        out2 = pl.pallas_call(
            _heatmap_loss_kernel,
            out_shape=jax.ShapeDtypeStruct((rows, LANES), out_dtype),
            grid=grid,
            in_specs=[
                pl.BlockSpec((block_r, LANES), lambda i: (i, 0)),
                pl.BlockSpec((block_r, LANES), lambda i: (i, 0)),
            ],
            out_specs=pl.BlockSpec((block_r, LANES), lambda i: (i, 0)),
            compiler_params=pltpu.CompilerParams(
                # Elementwise: let v7x shard the row axis across both TCs.
                dimension_semantics=("parallel",),
                # 12 MiB double-buffered f32 worst case; raise past v5e's
                # 16 MiB default scoped limit for headroom.
                vmem_limit_bytes=32 * 1024 * 1024,
            ),
        )(x2, t2)
        parts.append(out2.reshape(-1))

    if rem:
        # Small (<512-element) ragged tail: plain JAX, avoids a full pad+copy
        # of both inputs in HBM.
        parts.append(_heatmap_loss_math(x[main:], t[main:]).astype(out_dtype))

    out = parts[0] if len(parts) == 1 else jnp.concatenate(parts)
    return out.reshape(orig_shape)


def heatmap_loss_ref(inputs, targets):
    """Pure-JAX reference matching the PyTorch forward exactly (f32 math)."""
    x = inputs.astype(jnp.float32)
    t = targets.astype(jnp.float32)
    p = jax.nn.sigmoid(x)
    center_id = (t == 1.0).astype(p.dtype)
    other_id = (t != 1.0).astype(p.dtype)
    center_loss = -center_id * (1.0 - p) ** ALPHA * jnp.log(p + EPS)
    other_loss = -other_id * (1.0 - t) ** BETA * p ** ALPHA * jnp.log(1.0 - p + EPS)
    return center_loss + other_loss


if __name__ == "__main__":
    key = jax.random.PRNGKey(0)
    k1, k2, k3, k4 = jax.random.split(key, 4)

    # --- primary test: NCHW f32, 512-aligned total (2*4*16*16 = 2048) -------
    N, C, H, W = 2, 4, 16, 16
    inputs = jax.random.normal(k1, (N, C, H, W), dtype=jnp.float32)
    targets = jax.random.uniform(k2, (N, C, H, W), dtype=jnp.float32)
    targets = targets.at[:, :, 4, 4].set(1.0)
    targets = targets.at[:, :, 9, 11].set(1.0)

    out = jax.block_until_ready(heatmap_loss(inputs, targets))
    ref = heatmap_loss_ref(inputs, targets)
    assert out.shape == (N, C, H, W) and out.dtype == inputs.dtype
    max_err = float(jnp.max(jnp.abs(out - ref)))
    assert jnp.allclose(out, ref, atol=2e-5, rtol=2e-5), max_err

    # --- native bf16 I/O path (halved HBM traffic); lenient tolerance -------
    inputs_bf16 = inputs.astype(jnp.bfloat16)
    targets_bf16 = targets.astype(jnp.bfloat16)
    out_bf16 = jax.block_until_ready(heatmap_loss(inputs_bf16, targets_bf16))
    ref_bf16 = heatmap_loss_ref(inputs_bf16, targets_bf16)
    assert out_bf16.dtype == jnp.bfloat16
    assert jnp.allclose(out_bf16.astype(jnp.float32), ref_bf16, atol=5e-2, rtol=5e-2)

    # --- ragged shape (3*5*7*11 = 1155): kernel prefix + plain-JAX tail ------
    shp = (3, 5, 7, 11)
    xr = jax.random.normal(k3, shp, dtype=jnp.float32)
    tr = jax.random.uniform(k4, shp, dtype=jnp.float32)
    tr = tr.at[:, :, 3, 5].set(1.0)
    out_r = jax.block_until_ready(heatmap_loss(xr, tr))
    ref_r = heatmap_loss_ref(xr, tr)
    assert out_r.shape == shp
    assert jnp.allclose(out_r, ref_r, atol=2e-5, rtol=2e-5)

    print("KERNEL_OK")
</pallas_src>

<mosaic_0001>
module attributes {stable_mosaic.version = 11 : i64} {
  func.func @_heatmap_loss_kernel(%arg0: i32, %arg1: memref<4x512xf32, #tpu.memory_space<vmem>>, %arg2: memref<4x512xf32, #tpu.memory_space<vmem>>, %arg3: memref<4x512xf32, #tpu.memory_space<vmem>>) attributes {dimension_semantics = [#tpu.dimension_semantics<parallel>], iteration_bounds = array<i64: 1>, scalar_prefetch = 0 : i64, scratch_operands = 0 : i64, tpu.core_type = #tpu.core_type<tc>, window_params = [{transform_indices = @transform_0, window_bounds = array<i64: 4, 512>}, {transform_indices = @transform_1, window_bounds = array<i64: 4, 512>}, {transform_indices = @transform_2, window_bounds = array<i64: 4, 512>}]} {
    %c0 = arith.constant 0 : index
    %c0_0 = arith.constant 0 : index
    %0 = vector.load %arg1[%c0, %c0_0] : memref<4x512xf32, #tpu.memory_space<vmem>>, vector<4x512xf32>
    %c0_1 = arith.constant 0 : index
    %c0_2 = arith.constant 0 : index
    %1 = vector.load %arg2[%c0_1, %c0_2] : memref<4x512xf32, #tpu.memory_space<vmem>>, vector<4x512xf32>
    %2 = math.absf %0 : vector<4x512xf32>
    %cst = arith.constant 0.000000e+00 : f32
    %3 = vector.broadcast %cst : f32 to vector<4x512xf32>
    %4 = arith.subf %3, %2 : vector<4x512xf32>
    %5 = math.exp %4 : vector<4x512xf32>
    %cst_3 = arith.constant 1.000000e+00 : f32
    %6 = vector.broadcast %cst_3 : f32 to vector<4x512xf32>
    %7 = arith.addf %6, %5 : vector<4x512xf32>
    %8 = math.log %7 : vector<4x512xf32>
    %cst_4 = arith.constant 0.000000e+00 : f32
    %9 = vector.broadcast %cst_4 : f32 to vector<4x512xf32>
    %10 = arith.minimumf %0, %9 : vector<4x512xf32>
    %11 = arith.subf %10, %8 : vector<4x512xf32>
    %12 = arith.subf %11, %0 : vector<4x512xf32>
    %cst_5 = arith.constant -32.2361908 : f32
    %13 = vector.broadcast %cst_5 : f32 to vector<4x512xf32>
    %14 = arith.maximumf %11, %13 : vector<4x512xf32>
    %cst_6 = arith.constant -32.2361908 : f32
    %15 = vector.broadcast %cst_6 : f32 to vector<4x512xf32>
    %16 = arith.maximumf %12, %15 : vector<4x512xf32>
    %17 = math.exp %11 : vector<4x512xf32>
    %cst_7 = arith.constant 1.000000e+00 : f32
    %18 = vector.broadcast %cst_7 : f32 to vector<4x512xf32>
    %19 = arith.subf %18, %17 : vector<4x512xf32>
    %cst_8 = arith.constant 1.000000e+00 : f32
    %20 = vector.broadcast %cst_8 : f32 to vector<4x512xf32>
    %21 = arith.subf %20, %1 : vector<4x512xf32>
    %22 = arith.mulf %21, %21 : vector<4x512xf32>
    %23 = arith.mulf %19, %19 : vector<4x512xf32>
    %24 = arith.mulf %23, %14 : vector<4x512xf32>
    %25 = arith.mulf %22, %22 : vector<4x512xf32>
    %26 = arith.mulf %17, %17 : vector<4x512xf32>
    %27 = arith.mulf %25, %26 : vector<4x512xf32>
    %28 = arith.mulf %27, %16 : vector<4x512xf32>
    %cst_9 = arith.constant 1.000000e+00 : f32
    %29 = vector.broadcast %cst_9 : f32 to vector<4x512xf32>
    %30 = arith.cmpf oeq, %1, %29 : vector<4x512xf32>
    %31 = arith.select %30, %24, %28 : vector<4x512xi1>, vector<4x512xf32>
    %cst_10 = arith.constant 0.000000e+00 : f32
    %32 = vector.broadcast %cst_10 : f32 to vector<4x512xf32>
    %33 = arith.subf %32, %31 : vector<4x512xf32>
    %c0_11 = arith.constant 0 : index
    %c0_12 = arith.constant 0 : index
    %34 = vector.load %arg3[%c0_11, %c0_12] : memref<4x512xf32, #tpu.memory_space<vmem>>, vector<4x512xf32>
    tpu.vector_store %arg3[%c0_11, %c0_12], %33 {strides = array<i32>} : memref<4x512xf32, #tpu.memory_space<vmem>>, vector<4x512xf32>,
    return
  }
  func.func @transform_0(%arg0: i32) -> (i32, i32) {
    %c0_i32 = arith.constant 0 : i32
    %c0_i32_0 = arith.constant 0 : i32
    return %arg0, %c0_i32 : i32, i32
  }
  func.func @transform_1(%arg0: i32) -> (i32, i32) {
    %c0_i32 = arith.constant 0 : i32
    %c0_i32_0 = arith.constant 0 : i32
    return %arg0, %c0_i32 : i32, i32
  }
  func.func @transform_2(%arg0: i32) -> (i32, i32) {
    %c0_i32 = arith.constant 0 : i32
    %c0_i32_0 = arith.constant 0 : i32
    return %arg0, %c0_i32 : i32, i32
  }
}

</mosaic_0001>

<bundles_post_ra>
// kernel: tpu_custom_call.1
= control target key start
LH: loop header
LB: loop body
LE: loop exit
PB: predicated region body
PF: predicated region fallthrough
CT: control target
= control target key end

     0   :  { %7 = vsyncpa [#allocation3], 0  ;;  %s236_s0 = inlined_call_operand.hbm [shape: f32[4,512], index: 0, kind: input, shape index: {}]   ;;  %s237_s1 = inlined_call_operand.hbm [shape: f32[4,512], index: 1, kind: input, shape index: {}]   ;;  %s238_s2 = inlined_call_operand.hbm [shape: f32[4,512], index: 2, kind: output, shape index: {}]  }
   0x1   :  { %8 = vsyncpa [#allocation6], 0 }
   0x2   :  { %9 = vsyncpa [#allocation4], 0  ;;  %s15_s11 = sshll.u32 %s236_s0, 4  ;;  %s209_s12 = smov [#allocation2]   ;;  %s16_s11 = int_to_ptr.hbm [resolvable:$true] %s15_s11 }
   0x3   :  { %s17_s13 = sshll.u32 %s209_s12, 4  ;;  %s26_s16 = sshll.u32 %s237_s1, 4  ;;  %s18_s13 = int_to_ptr.vmem [resolvable:$true] %s17_s13  ;;  %s27_s16 = int_to_ptr.hbm [resolvable:$true] %s26_s16 }
   0x4   :  { %20 = dma.hbm_to_vmem [thread:$0]  %s16_s11, 256, %s18_s13, [#allocation3]  }
   0x5   :  { %s210_s17 = smov [#allocation5]  }
   0x6   :  { %s28_s18 = sshll.u32 %s210_s17, 4  ;;  %s29_s18 = int_to_ptr.vmem [resolvable:$true] %s28_s18 }
   0x7   :  { %31 = dma.hbm_to_vmem [thread:$0]  %s27_s16, 256, %s29_s18, [#allocation6]  }
   0x8   :  { %203 = dma.done.wait [#allocation3], 256  }
   0x9   :  { %204 = vsyncadd [#allocation3], 4294967040 }
   0xa   :  { %205 = dma.done.wait [#allocation6], 256  }
   0xb   :  { %206 = vsyncadd [#allocation6], 4294967040  ;;  %v40_v0 = vld [vmem:[#allocation2] sm:$0xff]  ;;  %v41_v1 = vld [vmem:[#allocation2 + $0x8] sm:$0xff]  ;;  %s211_s0 = smov [#allocation7]   ;;  %s105_s21 = sshll.u32 %s238_s2, 4  ;;  %s106_s21 = int_to_ptr.hbm [resolvable:$true] %s105_s21 }
   0xc   :  { %v44_v2 = vand.u32 2147483647, %v40_v0  ;;  %v45_v3 = vand.u32 2147483647, %v41_v1  ;;  %v58_v12 = vmin.f32 %v40_v0, 0.0  ;;  %v59_v14 = vmin.f32 %v41_v1, 0.0 }
   0xd   :  { %v42_v16 = vld [vmem:[#allocation5] sm:$0xff]  ;;  %v43_v18 = vld [vmem:[#allocation5 + $0x8] sm:$0xff]  ;;  %s103_s1 = sshll.u32 %s211_s0, 4  ;;  %s104_s1 = int_to_ptr.vmem [resolvable:$true] %s103_s1 }
   0xe   :  { %v46_v4 = vsub.f32 0.0, %v44_v2  ;;  %v47_v5 = vsub.f32 0.0, %v45_v3  ;;  %v74_v21 = vsub.f32 1.0, %v42_v16  ;;  %v75_v24 = vsub.f32 1.0, %v43_v18 }
   0xf   :  { %vm90_vm0 = vcmp.eq.f32.partialorder %v42_v16, 1.0  ;;  %vm91_vm1 = vcmp.eq.f32.partialorder %v43_v18, 1.0 }
  0x10   :  { %v48_v6 = vmul.f32 1.442695, %v46_v4  ;;  %v50_v7 = vmul.f32 1.442695, %v47_v5  ;;  %v76_v26 = vmul.f32 %v74_v21, %v74_v21  ;;  %v77_v27 = vmul.f32 %v75_v24, %v75_v24 }
  0x12   :  { %119 = vpow2.f32 %v48_v6  ;;  %v82_v30 = vmul.f32 %v76_v26, %v76_v26  ;;  %v83_v32 = vmul.f32 %v77_v27, %v77_v27 }
  0x13   :  { %121 = vpow2.f32 %v50_v7 }
  0x18   :  { %v120_v8 = vpop.eup %119 }
  0x19   :  { %v122_v9 = vpop.eup %121  ;;  %v52_v10 = vadd.f32 1.0, %v120_v8 }
  0x1a   :  { %v53_v11 = vadd.f32 1.0, %v122_v9 }
  0x1b   :  { %123 = vlog2.f32 %v52_v10 }
  0x1c   :  { %125 = vlog2.f32 %v53_v11 }
  0x21   :  { %v124_v13 = vpop.eup %123 }
  0x22   :  { %v126_v15 = vpop.eup %125  ;;  %v55_v17 = vmul.f32 0.6931472, %v124_v13 }
  0x23   :  { %v57_v19 = vmul.f32 0.6931472, %v126_v15 }
  0x24   :  { %v60_v20 = vsub.f32 %v58_v12, %v55_v17 }
  0x25   :  { %v61_v22 = vsub.f32 %v59_v14, %v57_v19 }
  0x26   :  { %v68_v23 = vmul.f32 1.442695, %v60_v20  ;;  %v62_v28 = vsub.f32 %v60_v20, %v40_v0  ;;  %v64_v34 = vmax.f32 %v60_v20, -32.23619 }
  0x27   :  { %v70_v25 = vmul.f32 1.442695, %v61_v22  ;;  %v63_v29 = vsub.f32 %v61_v22, %v41_v1  ;;  %v65_v38 = vmax.f32 %v61_v22, -32.23619 }
  0x28   :  { %127 = vpow2.f32 %v68_v23  ;;  %v66_v35 = vmax.f32 %v62_v28, -32.23619 }
  0x29   :  { %129 = vpow2.f32 %v70_v25  ;;  %v67_v39 = vmax.f32 %v63_v29, -32.23619 }
  0x2e   :  { %v128_v31 = vpop.eup %127 }
  0x2f   :  { %v130_v33 = vpop.eup %129  ;;  %v72_v36 = vsub.f32 1.0, %v128_v31  ;;  %v84_v37 = vmul.f32 %v128_v31, %v128_v31 }
  0x30   :  { %v73_v40 = vsub.f32 1.0, %v130_v33  ;;  %v85_v41 = vmul.f32 %v130_v33, %v130_v33 }
  0x31   :  { %v78_v42 = vmul.f32 %v72_v36, %v72_v36  ;;  %v86_v43 = vmul.f32 %v84_v37, %v82_v30 }
  0x32   :  { %v79_v44 = vmul.f32 %v73_v40, %v73_v40  ;;  %v87_v45 = vmul.f32 %v85_v41, %v83_v32 }
  0x33   :  { %v80_v46 = vmul.f32 %v78_v42, %v64_v34  ;;  %v88_v47 = vmul.f32 %v86_v43, %v66_v35 }
  0x34   :  { %v81_v48 = vmul.f32 %v79_v44, %v65_v38  ;;  %v89_v49 = vmul.f32 %v87_v45, %v67_v39 }
  0x35   :  { %v92_v50 = vsel %vm90_vm0, %v80_v46, %v88_v47 }
  0x36   :  { %v94_v51 = vsub.f32 0.0, %v92_v50  ;;  %v93_v52 = vsel %vm91_vm1, %v81_v48, %v89_v49 }
  0x37   :  { %v95_v53 = vsub.f32 0.0, %v93_v52 }
  0x38   :  { %96 = vst [vmem:[#allocation7] sm:$0xff] %v94_v51 }
  0x39   :  { %97 = vst [vmem:[#allocation7 + $0x8] sm:$0xff] %v95_v53 }
  0x3a   :  { %108 = dma.vmem_to_hbm [thread:$0]  %s104_s1, 256, %s106_s21, [#allocation4]  }
  0x3b   :  { %207 = dma.done.wait [#allocation4], 256  }
  0x3c   :  { %208 = vsyncadd [#allocation4], 4294967040 }
  0x3d   :  { %113 = vsyncpa [#allocation3], 1 }
  0x3e   :  { %114 = vsyncpa [#allocation6], 1 }
  0x3f   :  { %115 = vsyncpa [#allocation4], 1 }

</bundles_post_ra>
